<compile_context>
chip_gen: v5e
topology: v5e:2x2
jax: 0.10.0
libtpu: 0.0.40
codegen_flags: <defaults>
</compile_context>

<pallas_src>
import functools

import jax
import jax.numpy as jnp
import numpy as np
from jax.experimental import pallas as pl
from jax.experimental.pallas import tpu as pltpu

EPS = 1e-6
ALPHA = 0.1
P = 0.5

# Per-block byte budget for the streamed x tiles.  4 MiB amortizes the
# ~0.35 us per-grid-step overhead on v7x while staying cheap on v5e/v6e; the
# apply pass peaks at ~4 x 4 MiB of double-buffered in/out pipeline buffers.
_TARGET_BLOCK_BYTES = 4 << 20

# Explicit scoped-VMEM limit: above the 16 MiB (v5e) / 32 MiB (v6e, v7x)
# defaults so 4 MiB blocks still double-buffer, and below v7x's 64 MiB-per-TC
# physical VMEM.  Safe on every generation.
_VMEM_LIMIT_BYTES = 48 << 20


def _round_up(x, m):
    return (x + m - 1) // m * m


def _pick_tiles(B, C, HW, itemsize):
    """Pick (b_tile, c_tile, hw_tile) for x viewed as (B, C, H*W)."""
    target = _TARGET_BLOCK_BYTES
    # Stat blocks are (b_tile, c_tile): b_tile on sublanes -> multiple of 8 or
    # the full batch; c_tile on lanes -> multiple of 128 or the full C.
    b_tile = 8 if B % 8 == 0 else B

    # Tile C only when it is large and 128-aligned, so hw_tile never collapses
    # to 128 lanes (measured HBM-bandwidth knee is ~512 lanes).
    c_tile = C
    if C > 128 and C % 128 == 0 and b_tile * C * min(512, HW) * itemsize > target:
        cand = C
        while cand > 128:
            nxt = cand // 2
            if nxt % 128 != 0 or C % nxt != 0:
                break
            cand = nxt
            if b_tile * cand * min(512, HW) * itemsize <= target:
                break
        c_tile = cand

    row_bytes = b_tile * c_tile * itemsize
    if row_bytes * HW <= target:
        hw_tile = HW                      # whole spatial extent in one block
    else:
        lanes = max(128, (target // row_bytes) // 128 * 128)
        hw_tile = min(lanes, _round_up(HW, 128))
        if HW % 128 == 0:
            # Prefer a nearby exact divisor of HW (avoids the masked tail).
            t = hw_tile
            while t > max(128, hw_tile // 2) and HW % t != 0:
                t -= 128
            if HW % t == 0:
                hw_tile = t

    # Keep the worst-case pipeline buffers (2x in + 2x out blocks for the
    # apply pass) comfortably under the scoped-VMEM limit.
    budget = (_VMEM_LIMIT_BYTES * 3) // 4
    while hw_tile % 128 == 0 and hw_tile > 128 and \
            4 * b_tile * c_tile * hw_tile * itemsize > budget:
        hw_tile = max(128, (hw_tile // 2) // 128 * 128)
    return b_tile, c_tile, hw_tile


# ---------------------------------------------------------------------------
# Kernel 1: per-(B, C) spatial mean / unbiased std (shifted single pass).
# ---------------------------------------------------------------------------
def _stats_kernel(x_ref, mu_ref, sig_ref, pivot_ref, *,
                  hw_total, hw_tile, eps, ragged):
    # x_ref: (b_tile, c_tile, hw_tile) current spatial tile.
    # mu_ref / sig_ref: (b_tile, c_tile) accumulators, resident across the HW
    #   grid axis; hold running sum(x - pivot) / sum((x - pivot)^2), finalized
    #   to mean / unbiased std on the last HW tile.
    # pivot_ref: (b_tile, c_tile) VMEM scratch, per-(b, c) pivot = mean of the
    #   first tile (shifted accumulation avoids catastrophic cancellation).
    k = pl.program_id(2)

    @pl.when(k == 0)
    def _init():
        x0 = x_ref[...].astype(jnp.float32)
        if ragged:
            lane = jax.lax.broadcasted_iota(jnp.int32, x0.shape, 2)
            x0 = jnp.where(lane < hw_total, x0, 0.0)
        n0 = min(hw_tile, hw_total)
        pivot_ref[...] = jnp.sum(x0, axis=-1) / jnp.float32(n0)
        mu_ref[...] = jnp.zeros_like(mu_ref)
        sig_ref[...] = jnp.zeros_like(sig_ref)

    x = x_ref[...].astype(jnp.float32)
    xc = x - pivot_ref[...][:, :, None]
    if ragged:
        lane = jax.lax.broadcasted_iota(jnp.int32, xc.shape, 2)
        xc = jnp.where(lane < hw_total - k * hw_tile, xc, 0.0)
    mu_ref[...] += jnp.sum(xc, axis=-1)          # running sum(x - pivot)
    sig_ref[...] += jnp.sum(xc * xc, axis=-1)    # running sum((x - pivot)^2)

    @pl.when(k == pl.num_programs(2) - 1)
    def _finalize():
        n = jnp.float32(hw_total)
        s = mu_ref[...]
        s2 = sig_ref[...]
        mean = pivot_ref[...] + s / n
        # Unbiased variance (torch.var default, correction=1).  max(., 1)
        # guards the degenerate HW == 1 case (torch would produce NaN there).
        var = (s2 - s * s / n) / jnp.float32(max(hw_total - 1, 1))
        mu_ref[...] = mean
        sig_ref[...] = jnp.sqrt(jnp.maximum(var, 0.0) + eps)


# ---------------------------------------------------------------------------
# Kernel 2: y = x * scale + shift  (normalize + re-style folded into one FMA).
# ---------------------------------------------------------------------------
def _apply_kernel(x_ref, scale_ref, shift_ref, o_ref):
    x = x_ref[...].astype(jnp.float32)
    scale = scale_ref[...][:, :, None]   # (b_tile, c_tile, 1): lane broadcast
    shift = shift_ref[...][:, :, None]
    o_ref[...] = (x * scale + shift).astype(o_ref.dtype)


# ---------------------------------------------------------------------------
# pallas_call wrappers.
# ---------------------------------------------------------------------------
def _compute_stats(x3, eps):
    B, C, HW = x3.shape
    b_tile, c_tile, hw_tile = _pick_tiles(B, C, HW, x3.dtype.itemsize)
    n_hw = pl.cdiv(HW, hw_tile)
    ragged = (HW % hw_tile) != 0
    stat_spec = pl.BlockSpec((b_tile, c_tile), lambda b, c, k: (b, c))
    # TODO(synk): when B//b_tile == C//c_tile == 1 the v7x megacore still only
    # has one parallel slice for this pass; splitting HW into two parallel
    # partial-sum chunks would recover the idle core for tiny inputs.
    return pl.pallas_call(
        functools.partial(_stats_kernel, hw_total=HW, hw_tile=hw_tile,
                          eps=eps, ragged=ragged),
        out_shape=(jax.ShapeDtypeStruct((B, C), jnp.float32),
                   jax.ShapeDtypeStruct((B, C), jnp.float32)),
        grid=(B // b_tile, C // c_tile, n_hw),
        in_specs=[pl.BlockSpec((b_tile, c_tile, hw_tile),
                               lambda b, c, k: (b, c, k))],
        out_specs=(stat_spec, stat_spec),
        scratch_shapes=[pltpu.VMEM((b_tile, c_tile), jnp.float32)],
        compiler_params=pltpu.CompilerParams(
            dimension_semantics=("parallel", "parallel", "arbitrary"),
            vmem_limit_bytes=_VMEM_LIMIT_BYTES),
    )(x3)


def _apply_affine_impl(x3, scale, shift):
    B, C, HW = x3.shape
    b_tile, c_tile, hw_tile = _pick_tiles(B, C, HW, x3.dtype.itemsize)
    x_spec = pl.BlockSpec((b_tile, c_tile, hw_tile), lambda b, c, k: (b, c, k))
    stat_spec = pl.BlockSpec((b_tile, c_tile), lambda b, c, k: (b, c))
    # TODO(synk): expose input_output_aliases={0: 0} behind a flag for callers
    # that can donate x (saves one full-tensor HBM allocation, not traffic).
    return pl.pallas_call(
        _apply_kernel,
        out_shape=jax.ShapeDtypeStruct((B, C, HW), x3.dtype),
        grid=(B // b_tile, C // c_tile, pl.cdiv(HW, hw_tile)),
        in_specs=[x_spec, stat_spec, stat_spec],
        out_specs=x_spec,
        compiler_params=pltpu.CompilerParams(
            dimension_semantics=("parallel", "parallel", "parallel"),
            vmem_limit_bytes=_VMEM_LIMIT_BYTES),
    )(x3, scale, shift)


@jax.custom_vjp
def _apply_affine(x3, scale, shift):
    return _apply_affine_impl(x3, scale, shift)


def _apply_affine_fwd(x3, scale, shift):
    return _apply_affine_impl(x3, scale, shift), (scale, shift)


def _apply_affine_bwd(res, g):
    scale, shift = res
    # y = x * scale + shift  =>  dL/dx = g * scale  (reuse the same FMA kernel
    # with shift = 0).
    dx = _apply_affine_impl(g, scale, jnp.zeros_like(shift))
    # In MixStyle scale/shift derive from detached stats and a non-trainable
    # Beta sample, so their cotangents never propagate; return zeros.
    return dx, jnp.zeros_like(scale), jnp.zeros_like(shift)


_apply_affine.defvjp(_apply_affine_fwd, _apply_affine_bwd)


# ---------------------------------------------------------------------------
# JAX glue (Beta sample, permutation, stat mixing, coin flip).
# ---------------------------------------------------------------------------
def _make_perm(k_perm, B, mix):
    if mix == 'random':
        return jax.random.permutation(k_perm, B)
    elif mix == 'crossdomain':
        perm = jnp.arange(B - 1, -1, -1)
        half = (B + 1) // 2  # torch.chunk(2): ceil(B/2) in the first chunk
        perm_b, perm_a = perm[:half], perm[half:]
        kb, ka = jax.random.split(k_perm)
        perm_b = perm_b[jax.random.permutation(kb, perm_b.shape[0])]
        perm_a = perm_a[jax.random.permutation(ka, perm_a.shape[0])]
        return jnp.concatenate([perm_b, perm_a], 0)
    raise NotImplementedError(mix)


def _mixstyle_mixed(x, k_beta, k_perm, alpha, eps, mix):
    """Always-apply MixStyle path (the `random() <= p` branch)."""
    B, C, H, W = x.shape
    x3 = x.reshape(B, C, H * W)

    # torch: mu.detach() / sig.detach().  Detaching the *input* of the stats
    # kernel is equivalent and keeps jax.grad from needing a VJP for the
    # reduction pallas_call.
    mu, sig = _compute_stats(jax.lax.stop_gradient(x3), eps)   # (B, C) f32

    lmda = jax.random.beta(k_beta, alpha, alpha, shape=(B, 1)).astype(jnp.float32)
    perm = _make_perm(k_perm, B, mix)

    mu2, sig2 = mu[perm], sig[perm]
    mu_mix = mu * lmda + mu2 * (1.0 - lmda)
    sig_mix = sig * lmda + sig2 * (1.0 - lmda)

    # Fold (x - mu) / sig * sig_mix + mu_mix into one per-element FMA.
    scale = sig_mix / sig
    shift = mu_mix - mu * scale

    return _apply_affine(x3, scale, shift).reshape(B, C, H, W)


def mixstyle_forward(x, key, p=P, alpha=ALPHA, eps=EPS, training=True,
                     activated=True, mix='random'):
    """MixStyle forward. x: (B, C, H, W), NCHW like the PyTorch module."""
    if not training or not activated:
        return x
    k_coin, k_beta, k_perm = jax.random.split(key, 3)
    # `if random.random() > self.p: return x`  ->  apply mixing with prob p.
    apply_mix = jax.random.uniform(k_coin, ()) <= p
    # lax.cond: the no-mix path returns x bitwise-exactly and skips all kernel
    # work.  (Under vmap this lowers to a select and both branches execute.)
    return jax.lax.cond(
        apply_mix,
        lambda: _mixstyle_mixed(x, k_beta, k_perm, alpha, eps, mix),
        lambda: x,
    )


# ---------------------------------------------------------------------------
# Pure-JAX reference (always-apply path, same RNG draws) for self-checking.
# ---------------------------------------------------------------------------
def _reference_mixed(x, k_beta, k_perm, alpha, eps, mix):
    B = x.shape[0]
    mu = jnp.mean(x, axis=(2, 3), keepdims=True)
    var = jnp.var(x, axis=(2, 3), keepdims=True, ddof=1)
    sig = jnp.sqrt(var + eps)
    mu = jax.lax.stop_gradient(mu)
    sig = jax.lax.stop_gradient(sig)
    x_normed = (x - mu) / sig
    lmda = jax.random.beta(k_beta, alpha, alpha, shape=(B, 1)).astype(jnp.float32)
    lmda = lmda.reshape(B, 1, 1, 1)
    perm = _make_perm(k_perm, B, mix)
    mu2, sig2 = mu[perm], sig[perm]
    mu_mix = mu * lmda + mu2 * (1.0 - lmda)
    sig_mix = sig * lmda + sig2 * (1.0 - lmda)
    return x_normed * sig_mix + mu_mix


if __name__ == "__main__":
    key = jax.random.PRNGKey(0)
    k_x, k_fwd = jax.random.split(key)

    B, C, H, W = 2, 4, 16, 16
    # Shift away from zero mean so the shifted-variance path is meaningfully
    # exercised (post-ReLU-like statistics).
    x = jax.random.normal(k_x, (B, C, H, W), dtype=jnp.float32) + 3.0

    # Full forward (with the probability-p coin flip via lax.cond).
    fwd = jax.jit(functools.partial(mixstyle_forward, training=True,
                                    activated=True, mix='random'))
    out = jax.block_until_ready(fwd(x, k_fwd))
    assert out.shape == (B, C, H, W)
    assert out.dtype == x.dtype

    # Numerical self-checks of the always-apply path against a pure-JAX
    # reference using identical RNG draws.
    _, k_beta, k_perm = jax.random.split(k_fwd, 3)

    def _check(xv, mix):
        got = jax.block_until_ready(
            _mixstyle_mixed(xv, k_beta, k_perm, ALPHA, EPS, mix))
        want = _reference_mixed(xv, k_beta, k_perm, ALPHA, EPS, mix)
        np.testing.assert_allclose(np.asarray(got), np.asarray(want),
                                   rtol=2e-4, atol=2e-4)

    _check(x, 'random')
    _check(x, 'crossdomain')

    # Gradient path (custom_vjp on the apply kernel; stats computed on
    # stop_gradient(x) so no VJP is needed for the reduction kernel).
    g = jax.grad(lambda xx: jnp.sum(
        _mixstyle_mixed(xx, k_beta, k_perm, ALPHA, EPS, 'random')))(x)
    g_ref = jax.grad(lambda xx: jnp.sum(
        _reference_mixed(xx, k_beta, k_perm, ALPHA, EPS, 'random')))(x)
    np.testing.assert_allclose(np.asarray(g), np.asarray(g_ref),
                               rtol=2e-4, atol=2e-4)

    # Exercise the ragged-HW / multi-step masked-reduction path (HW = 400 is
    # not a multiple of 128) by shrinking the per-block byte budget so the
    # kernels tile HW into 128-lane blocks with a masked tail.
    x2 = jax.random.normal(jax.random.PRNGKey(1), (2, 8, 20, 20),
                           dtype=jnp.float32) + 2.0
    _TARGET_BLOCK_BYTES = 8 * 1024
    _check(x2, 'random')
    _TARGET_BLOCK_BYTES = 4 << 20

    print("KERNEL_OK")
</pallas_src>

<mosaic_0001>
module attributes {stable_mosaic.version = 11 : i64} {
  func.func @_apply_kernel(%arg0: i32, %arg1: i32, %arg2: i32, %arg3: memref<2x4x256xf32, #tpu.memory_space<vmem>>, %arg4: memref<2x4xf32, #tpu.memory_space<vmem>>, %arg5: memref<2x4xf32, #tpu.memory_space<vmem>>, %arg6: memref<2x4x256xf32, #tpu.memory_space<vmem>>) attributes {dimension_semantics = [#tpu.dimension_semantics<parallel>, #tpu.dimension_semantics<parallel>, #tpu.dimension_semantics<parallel>], iteration_bounds = array<i64: 1, 1, 1>, scalar_prefetch = 0 : i64, scratch_operands = 0 : i64, tpu.core_type = #tpu.core_type<tc>, window_params = [{transform_indices = @transform_0, window_bounds = array<i64: 2, 4, 256>}, {transform_indices = @transform_1, window_bounds = array<i64: 2, 4>}, {transform_indices = @transform_2, window_bounds = array<i64: 2, 4>}, {transform_indices = @transform_3, window_bounds = array<i64: 2, 4, 256>}]} {
    %c0 = arith.constant 0 : index
    %c0_0 = arith.constant 0 : index
    %c0_1 = arith.constant 0 : index
    %0 = vector.load %arg3[%c0, %c0_0, %c0_1] : memref<2x4x256xf32, #tpu.memory_space<vmem>>, vector<2x4x256xf32>
    %c0_2 = arith.constant 0 : index
    %c0_3 = arith.constant 0 : index
    %1 = vector.load %arg4[%c0_2, %c0_3] : memref<2x4xf32, #tpu.memory_space<vmem>>, vector<2x4xf32>
    %2 = vector.shape_cast %1 : vector<2x4xf32> to vector<2x4x1xf32>
    %c0_4 = arith.constant 0 : index
    %c0_5 = arith.constant 0 : index
    %3 = vector.load %arg5[%c0_4, %c0_5] : memref<2x4xf32, #tpu.memory_space<vmem>>, vector<2x4xf32>
    %4 = vector.shape_cast %3 : vector<2x4xf32> to vector<2x4x1xf32>
    %5 = vector.broadcast %2 : vector<2x4x1xf32> to vector<2x4x256xf32>
    %6 = arith.mulf %0, %5 : vector<2x4x256xf32>
    %7 = vector.broadcast %4 : vector<2x4x1xf32> to vector<2x4x256xf32>
    %8 = arith.addf %6, %7 : vector<2x4x256xf32>
    %c0_6 = arith.constant 0 : index
    %c0_7 = arith.constant 0 : index
    %c0_8 = arith.constant 0 : index
    %9 = vector.load %arg6[%c0_6, %c0_7, %c0_8] : memref<2x4x256xf32, #tpu.memory_space<vmem>>, vector<2x4x256xf32>
    tpu.vector_store %arg6[%c0_6, %c0_7, %c0_8], %8 {strides = array<i32>} : memref<2x4x256xf32, #tpu.memory_space<vmem>>, vector<2x4x256xf32>,
    return
  }
  func.func @transform_0(%arg0: i32, %arg1: i32, %arg2: i32) -> (i32, i32, i32) {
    %c0_i32 = arith.constant 0 : i32
    return %arg0, %arg1, %arg2 : i32, i32, i32
  }
  func.func @transform_1(%arg0: i32, %arg1: i32, %arg2: i32) -> (i32, i32) {
    %c0_i32 = arith.constant 0 : i32
    return %arg0, %arg1 : i32, i32
  }
  func.func @transform_2(%arg0: i32, %arg1: i32, %arg2: i32) -> (i32, i32) {
    %c0_i32 = arith.constant 0 : i32
    return %arg0, %arg1 : i32, i32
  }
  func.func @transform_3(%arg0: i32, %arg1: i32, %arg2: i32) -> (i32, i32, i32) {
    %c0_i32 = arith.constant 0 : i32
    return %arg0, %arg1, %arg2 : i32, i32, i32
  }
}

module attributes {stable_mosaic.version = 11 : i64} {
  func.func @_stats_kernel(%arg0: i32, %arg1: i32, %arg2: i32, %arg3: memref<2x4x256xf32, #tpu.memory_space<vmem>>, %arg4: memref<2x4xf32, #tpu.memory_space<vmem>>, %arg5: memref<2x4xf32, #tpu.memory_space<vmem>>, %arg6: memref<2x4xf32, #tpu.memory_space<vmem>>) attributes {dimension_semantics = [#tpu.dimension_semantics<parallel>, #tpu.dimension_semantics<parallel>, #tpu.dimension_semantics<arbitrary>], iteration_bounds = array<i64: 1, 1, 1>, scalar_prefetch = 0 : i64, scratch_operands = 1 : i64, tpu.core_type = #tpu.core_type<tc>, window_params = [{transform_indices = @transform_0, window_bounds = array<i64: 2, 4, 256>}, {transform_indices = @transform_1, window_bounds = array<i64: 2, 4>}, {transform_indices = @transform_2, window_bounds = array<i64: 2, 4>}]} {
    %c0_i32 = arith.constant 0 : i32
    %0 = arith.cmpi eq, %arg2, %c0_i32 : i32
    %1 = arith.extui %0 : i1 to i32
    %c0_i32_0 = arith.constant 0 : i32
    %2 = arith.cmpi ne, %1, %c0_i32_0 : i32
    scf.if %2 {
      %c0_16 = arith.constant 0 : index
      %c0_17 = arith.constant 0 : index
      %c0_18 = arith.constant 0 : index
      %20 = vector.load %arg3[%c0_16, %c0_17, %c0_18] : memref<2x4x256xf32, #tpu.memory_space<vmem>>, vector<2x4x256xf32>
      %cst_19 = arith.constant dense<0.000000e+00> : vector<2x4xf32>
      %21 = vector.multi_reduction <add>, %20, %cst_19 [2] : vector<2x4x256xf32> to vector<2x4xf32>
      %cst_20 = arith.constant 2.560000e+02 : f32
      %22 = vector.broadcast %cst_20 : f32 to vector<2x4xf32>
      %23 = arith.divf %21, %22 : vector<2x4xf32>
      %c0_21 = arith.constant 0 : index
      %c0_22 = arith.constant 0 : index
      %24 = vector.load %arg6[%c0_21, %c0_22] : memref<2x4xf32, #tpu.memory_space<vmem>>, vector<2x4xf32>
      tpu.vector_store %arg6[%c0_21, %c0_22], %23 {strides = array<i32>} : memref<2x4xf32, #tpu.memory_space<vmem>>, vector<2x4xf32>,
      %cst_23 = arith.constant 0.000000e+00 : f32
      %25 = vector.broadcast %cst_23 : f32 to vector<2x4xf32>
      %c0_24 = arith.constant 0 : index
      %c0_25 = arith.constant 0 : index
      %26 = vector.load %arg4[%c0_24, %c0_25] : memref<2x4xf32, #tpu.memory_space<vmem>>, vector<2x4xf32>
      tpu.vector_store %arg4[%c0_24, %c0_25], %25 {strides = array<i32>} : memref<2x4xf32, #tpu.memory_space<vmem>>, vector<2x4xf32>,
      %cst_26 = arith.constant 0.000000e+00 : f32
      %27 = vector.broadcast %cst_26 : f32 to vector<2x4xf32>
      %c0_27 = arith.constant 0 : index
      %c0_28 = arith.constant 0 : index
      %28 = vector.load %arg5[%c0_27, %c0_28] : memref<2x4xf32, #tpu.memory_space<vmem>>, vector<2x4xf32>
      tpu.vector_store %arg5[%c0_27, %c0_28], %27 {strides = array<i32>} : memref<2x4xf32, #tpu.memory_space<vmem>>, vector<2x4xf32>,
    } else {
    }
    %c0 = arith.constant 0 : index
    %c0_1 = arith.constant 0 : index
    %c0_2 = arith.constant 0 : index
    %3 = vector.load %arg3[%c0, %c0_1, %c0_2] : memref<2x4x256xf32, #tpu.memory_space<vmem>>, vector<2x4x256xf32>
    %c0_3 = arith.constant 0 : index
    %c0_4 = arith.constant 0 : index
    %4 = vector.load %arg6[%c0_3, %c0_4] : memref<2x4xf32, #tpu.memory_space<vmem>>, vector<2x4xf32>
    %5 = vector.shape_cast %4 : vector<2x4xf32> to vector<2x4x1xf32>
    %6 = vector.broadcast %5 : vector<2x4x1xf32> to vector<2x4x256xf32>
    %7 = arith.subf %3, %6 : vector<2x4x256xf32>
    %c0_5 = arith.constant 0 : index
    %c0_6 = arith.constant 0 : index
    %8 = vector.load %arg4[%c0_5, %c0_6] : memref<2x4xf32, #tpu.memory_space<vmem>>, vector<2x4xf32>
    %cst = arith.constant dense<0.000000e+00> : vector<2x4xf32>
    %9 = vector.multi_reduction <add>, %7, %cst [2] : vector<2x4x256xf32> to vector<2x4xf32>
    %10 = arith.addf %8, %9 : vector<2x4xf32>
    %c0_7 = arith.constant 0 : index
    %c0_8 = arith.constant 0 : index
    %11 = vector.load %arg4[%c0_7, %c0_8] : memref<2x4xf32, #tpu.memory_space<vmem>>, vector<2x4xf32>
    tpu.vector_store %arg4[%c0_7, %c0_8], %10 {strides = array<i32>} : memref<2x4xf32, #tpu.memory_space<vmem>>, vector<2x4xf32>,
    %c0_9 = arith.constant 0 : index
    %c0_10 = arith.constant 0 : index
    %12 = vector.load %arg5[%c0_9, %c0_10] : memref<2x4xf32, #tpu.memory_space<vmem>>, vector<2x4xf32>
    %13 = arith.mulf %7, %7 : vector<2x4x256xf32>
    %cst_11 = arith.constant dense<0.000000e+00> : vector<2x4xf32>
    %14 = vector.multi_reduction <add>, %13, %cst_11 [2] : vector<2x4x256xf32> to vector<2x4xf32>
    %15 = arith.addf %12, %14 : vector<2x4xf32>
    %c0_12 = arith.constant 0 : index
    %c0_13 = arith.constant 0 : index
    %16 = vector.load %arg5[%c0_12, %c0_13] : memref<2x4xf32, #tpu.memory_space<vmem>>, vector<2x4xf32>
    tpu.vector_store %arg5[%c0_12, %c0_13], %15 {strides = array<i32>} : memref<2x4xf32, #tpu.memory_space<vmem>>, vector<2x4xf32>,
    %c0_i32_14 = arith.constant 0 : i32
    %17 = arith.cmpi eq, %arg2, %c0_i32_14 : i32
    %18 = arith.extui %17 : i1 to i32
    %c0_i32_15 = arith.constant 0 : i32
    %19 = arith.cmpi ne, %18, %c0_i32_15 : i32
    scf.if %19 {
      %c0_16 = arith.constant 0 : index
      %c0_17 = arith.constant 0 : index
      %20 = vector.load %arg4[%c0_16, %c0_17] : memref<2x4xf32, #tpu.memory_space<vmem>>, vector<2x4xf32>
      %c0_18 = arith.constant 0 : index
      %c0_19 = arith.constant 0 : index
      %21 = vector.load %arg5[%c0_18, %c0_19] : memref<2x4xf32, #tpu.memory_space<vmem>>, vector<2x4xf32>
      %c0_20 = arith.constant 0 : index
      %c0_21 = arith.constant 0 : index
      %22 = vector.load %arg6[%c0_20, %c0_21] : memref<2x4xf32, #tpu.memory_space<vmem>>, vector<2x4xf32>
      %cst_22 = arith.constant 2.560000e+02 : f32
      %23 = vector.broadcast %cst_22 : f32 to vector<2x4xf32>
      %24 = arith.divf %20, %23 : vector<2x4xf32>
      %25 = arith.addf %22, %24 : vector<2x4xf32>
      %26 = arith.mulf %20, %20 : vector<2x4xf32>
      %cst_23 = arith.constant 2.560000e+02 : f32
      %27 = vector.broadcast %cst_23 : f32 to vector<2x4xf32>
      %28 = arith.divf %26, %27 : vector<2x4xf32>
      %29 = arith.subf %21, %28 : vector<2x4xf32>
      %cst_24 = arith.constant 2.550000e+02 : f32
      %30 = vector.broadcast %cst_24 : f32 to vector<2x4xf32>
      %31 = arith.divf %29, %30 : vector<2x4xf32>
      %c0_25 = arith.constant 0 : index
      %c0_26 = arith.constant 0 : index
      %32 = vector.load %arg4[%c0_25, %c0_26] : memref<2x4xf32, #tpu.memory_space<vmem>>, vector<2x4xf32>
      tpu.vector_store %arg4[%c0_25, %c0_26], %25 {strides = array<i32>} : memref<2x4xf32, #tpu.memory_space<vmem>>, vector<2x4xf32>,
      %cst_27 = arith.constant 0.000000e+00 : f32
      %33 = vector.broadcast %cst_27 : f32 to vector<2x4xf32>
      %34 = arith.maximumf %31, %33 : vector<2x4xf32>
      %cst_28 = arith.constant 9.99999997E-7 : f32
      %35 = vector.broadcast %cst_28 : f32 to vector<2x4xf32>
      %36 = arith.addf %34, %35 : vector<2x4xf32>
      %37 = math.sqrt %36 : vector<2x4xf32>
      %c0_29 = arith.constant 0 : index
      %c0_30 = arith.constant 0 : index
      %38 = vector.load %arg5[%c0_29, %c0_30] : memref<2x4xf32, #tpu.memory_space<vmem>>, vector<2x4xf32>
      tpu.vector_store %arg5[%c0_29, %c0_30], %37 {strides = array<i32>} : memref<2x4xf32, #tpu.memory_space<vmem>>, vector<2x4xf32>,
    } else {
    }
    return
  }
  func.func @transform_0(%arg0: i32, %arg1: i32, %arg2: i32) -> (i32, i32, i32) {
    %c0_i32 = arith.constant 0 : i32
    return %arg0, %arg1, %arg2 : i32, i32, i32
  }
  func.func @transform_1(%arg0: i32, %arg1: i32, %arg2: i32) -> (i32, i32) {
    %c0_i32 = arith.constant 0 : i32
    return %arg0, %arg1 : i32, i32
  }
  func.func @transform_2(%arg0: i32, %arg1: i32, %arg2: i32) -> (i32, i32) {
    %c0_i32 = arith.constant 0 : i32
    return %arg0, %arg1 : i32, i32
  }
}

</mosaic_0001>

<bundles_post_ra>
// kernel: branch_1_fun.3
= control target key start
LH: loop header
LB: loop body
LE: loop exit
PB: predicated region body
PF: predicated region fallthrough
CT: control target
= control target key end

     0   :  { %v18_v0 = vlaneseq  ;;  %v83_v8 = vmov 839922192   ;;  %s122_s2 = inlined_call_operand.vmem [shape: f32[2,4], index: 2, kind: input, shape index: {}]   ;;  %s123_s1 = inlined_call_operand.vmem [shape: f32[2,4], index: 1, kind: input, shape index: {}]   ;;  %s124_s0 = inlined_call_operand.vmem [shape: f32[2,4,256], index: 0, kind: input, shape index: {}]   ;;  %s125_s3 = inlined_call_operand.vmem [shape: f32[2,4,256], index: 3, kind: output, shape index: {}]  }
   0x1   :  { %v31_v2 = vld [vmem:[%s122_s2] sm:$0x3]  ;;  %v49_v9 = vunpack.c.l.s4 %v83_v8  ;;  %v15_v20 = vld [vmem:[%s124_s0 + $0x8] sm:$0xff] }
   0x2   :  { %v19_v1 = vshrl.u32 %v18_v0, 7  ;;  %v16_v3 = vld [vmem:[%s123_s1] sm:$0x3]  ;;  %v32_v4 = vperm.slane %v31_v2, 0  ;;  %v39_v6 = vperm.slane %v31_v2, 1 }
   0x3   :  { %v17_v5 = vperm.slane %v16_v3, 0  ;;  %v24_v7 = vperm.slane %v16_v3, 1  ;;  %v50_v10 = vunpack.c.0.s8 %v49_v9  ;;  %v14_v13 = vld [vmem:[%s124_s0] sm:$0xff] }
   0x4   :  { %82 = vset.pattern.permute.xlu1 %v19_v1  ;;  %81 = vset.pattern.permute.xlu0 %v19_v1 }
   0xc   :  { %37 = vperm.xlu1 %82, %v32_v4   ;;  %22 = vperm.xlu0 %81, %v17_v5  }
  0x14   :  { %44 = vperm.xlu1 %82, %v39_v6   ;;  %29 = vperm.xlu0 %81, %v24_v7  }
  0x7e   :  { %v38_v11 = vpop.permute.xlu1 %37  ;;  %v23_v12 = vpop.permute.xlu0 %22 }
  0x7f   :  { %v65_v14 = vperm.slane %v38_v11, %v50_v10  ;;  %v51_v15 = vperm.slane %v23_v12, %v50_v10 }
  0x81   :  { %v58_v16 = vmul.f32 %v51_v15, %v14_v13 }
  0x83   :  { %v72_v17 = vadd.f32 %v65_v14, %v58_v16 }
  0x85   :  { %74 = vst [vmem:[%s125_s3] sm:$0xff] %v72_v17 }
  0x86   :  { %v45_v18 = vpop.permute.xlu1 %44  ;;  %v30_v19 = vpop.permute.xlu0 %29 }
  0x87   :  { %v55_v21 = vperm.slane %v30_v19, %v50_v10  ;;  %v69_v22 = vperm.slane %v45_v18, %v50_v10 }
  0x89   :  { %v59_v23 = vmul.f32 %v55_v21, %v15_v20 }
  0x8b   :  { %v73_v24 = vadd.f32 %v69_v22, %v59_v23 }
  0x8d   :  { %75 = vst [vmem:[%s125_s3 + $0x8] sm:$0xff] %v73_v24 }

// kernel: branch_1_fun.2
= control target key start
LH: loop header
LB: loop body
LE: loop exit
PB: predicated region body
PF: predicated region fallthrough
CT: control target
= control target key end

     0   :  { %vm29_vm0 = vcmask 1043456   ;;  %v226_v12 = vmov 256.0   ;;  %v51_v13 = vlaneseq  ;;  %vm55_vm2 = vcmask 1041409   ;;  %s317_s0 = inlined_call_operand.vmem [shape: f32[2,4,256], index: 0, kind: input, shape index: {}]   ;;  %s318_s1 = inlined_call_operand.vmem [shape: f32[2,4], index: 1, kind: output, shape index: {0}]   ;;  %s319_s2 = inlined_call_operand.vmem [shape: f32[2,4], index: 2, kind: output, shape index: {1}]  }
   0x1   :  { %v14_v0 = vld [vmem:[%s317_s0] sm:$0xff]  ;;  %v15_v1 = vld [vmem:[%s317_s0 + $0x8] sm:$0xff]  ;;  %220 = vrcp.f32 %v226_v12  ;;  %vm58_vm3 = vcmask 25600   ;;  %v227_v32 = vmov 839922192   ;;  %v228_v63 = vmov 0.0  }
   0x2   :  { %18 = vst [vmem:[#allocation1] ss:$2 sm:$0xff] %v14_v0  ;;  %v67_v14 = vshrl.u32 %v51_v13, 7  ;;  %v257_v22 = vand.u32 127, %v51_v13  ;;  %v82_v33 = vunpack.c.l.s4 %v227_v32 }
   0x3   :  { %22 = vst [vmem:[#allocation1 + $0x10] ss:$2 sm:$0xff] %v15_v1 }
   0x4   :  { %218 = vset.pattern.permute.xlu1 %v67_v14  ;;  %219 = vset.pattern.permute.xlu0 %v67_v14  ;;  %v83_v34 = vunpack.c.0.s8 %v82_v33  ;;  %60 = vst.msk [vmem:[%s318_s1] sm:$0x3] %vm58_vm3, %v228_v63 }
   0x5   :  { %61 = vst.msk [vmem:[%s319_s2] sm:$0x3] %vm58_vm3, %v228_v63 }
   0x7   :  { %v221_v15 = vpop.eup %220 }
   0x8   :  { %v41_v16 = vmul.f32 256.0, %v221_v15  ;;  %vm45_vm1 = vweird.f32 %v221_v15 }
   0x9   :  { %v19_v2 = vld.sshfl [vmem:[#allocation1] sm:$0xff pattern:$0x75316420]  ;;  %v20_v3 = vld.sshfl [vmem:[#allocation1 + $0x8] sm:$0xff pattern:$0x75316420] }
   0xa   :  { %v30_v4 = vsel %vm29_vm0, %v19_v2, 0.0  ;;  %v31_v5 = vsel %vm29_vm0, %v20_v3, 0.0  ;;  %v23_v7 = vld.sshfl [vmem:[#allocation1 + $0x10] sm:$0xff pattern:$0x75316420]  ;;  %v42_v17 = vsub.f32 1.0, %v41_v16 }
   0xb   :  { %v32_v6 = vadd.f32 %v31_v5, %v30_v4  ;;  %v24_v8 = vld.sshfl [vmem:[#allocation1 + $0x18] sm:$0xff pattern:$0x75316420]  ;;  %v35_v9 = vsel %vm29_vm0, %v23_v7, 0.0  ;;  %v93_v4 = vld [vmem:[%s318_s1] sm:$0x3] }
   0xc   :  { %v36_v10 = vsel %vm29_vm0, %v24_v8, 0.0  ;;  %v43_v18 = vmul.f32 %v221_v15, %v42_v17  ;;  %v130_v13 = vld [vmem:[%s319_s2] sm:$0x3] }
   0xd   :  { %33 = vadd.xlane.f32.xlu0 %v32_v6  ;;  %v37_v11 = vadd.f32 %v36_v10, %v35_v9 }
   0xe   :  { %v44_v19 = vadd.f32 %v221_v15, %v43_v18 }
  0x10   :  { %v255_v21 = vsel %vm45_vm1, %v221_v15, %v44_v19 }
  0x15   :  { %38 = vadd.xlane.f32.xlu0 %v37_v11 }
  0x80   :  { %v34_v20 = vpop.xlane.xlu0 %33 }
  0x81   :  { %v47_v23 = vmul.f32 %v255_v21, %v34_v20 }
  0x83   :  { %v53_v26 = vperm.slane %v47_v23, %v257_v22 }
  0x88   :  { %v39_v24 = vpop.xlane.xlu0 %38 }
  0x89   :  { %v48_v25 = vmul.f32 %v255_v21, %v39_v24 }
  0x8b   :  { %v54_v27 = vperm.slane %v48_v25, %v257_v22 }
  0x8d   :  { %v56_v28 = vsel %vm55_vm2, %v54_v27, %v53_v26 }
  0x8e   :  { %59 = vst.msk [vmem:[#allocation2] sm:$0x3] %vm58_vm3, %v56_v28 }
  0x95   :  { %v64_v29 = vld [vmem:[#allocation2] sm:$0x3] }
  0x96   :  { %v65_v30 = vperm.slane %v64_v29, 0  ;;  %v72_v31 = vperm.slane %v64_v29, 1  ;;  %v169_v23 = vld [vmem:[#allocation2] sm:$0x3] }
  0x98   :  { %70 = vperm.xlu1 %218, %v65_v30  }
  0xa0   :  { %77 = vperm.xlu1 %218, %v72_v31  }
 0x10a   :  { %v71_v35 = vpop.permute.xlu1 %70 }
 0x10b   :  { %v84_v36 = vperm.slane %v71_v35, %v83_v34 }
 0x10d   :  { %v91_v37 = vsub.f32 %v14_v0, %v84_v36 }
 0x10f   :  { %96 = vst [vmem:[#allocation1] ss:$2 sm:$0xff] %v91_v37  ;;  %v131_v41 = vmul.f32 %v91_v37, %v91_v37 }
 0x112   :  { %v78_v38 = vpop.permute.xlu1 %77 }
 0x113   :  { %v88_v39 = vperm.slane %v78_v38, %v83_v34 }
 0x115   :  { %v92_v40 = vsub.f32 %v15_v1, %v88_v39  ;;  %v229_v1 = vmov 255.0  }
 0x116   :  { %v97_v42 = vld.sshfl [vmem:[#allocation1] sm:$0xff pattern:$0x75316420]  ;;  %v98_v43 = vld.sshfl [vmem:[#allocation1 + $0x8] sm:$0xff pattern:$0x75316420]  ;;  %222 = vrcp.f32 %v229_v1 }
 0x117   :  { %100 = vst [vmem:[#allocation1 + $0x10] ss:$2 sm:$0xff] %v92_v40  ;;  %v108_v44 = vsel %vm29_vm0, %v97_v42, 0.0  ;;  %v109_v45 = vsel %vm29_vm0, %v98_v43, 0.0  ;;  %v132_v47 = vmul.f32 %v92_v40, %v92_v40 }
 0x118   :  { %v110_v46 = vadd.f32 %v109_v45, %v108_v44  ;;  %135 = vst [vmem:[#allocation1] ss:$2 sm:$0xff] %v131_v41 }
 0x11a   :  { %111 = vadd.xlane.f32.xlu2 %v110_v46 }
 0x11c   :  { %v223_v6 = vpop.eup %222 }
 0x11d   :  { %v183_v9 = vmul.f32 255.0, %v223_v6  ;;  %vm187_vm4 = vweird.f32 %v223_v6 }
 0x11e   :  { %v101_v48 = vld.sshfl [vmem:[#allocation1 + $0x10] sm:$0xff pattern:$0x75316420]  ;;  %v102_v49 = vld.sshfl [vmem:[#allocation1 + $0x18] sm:$0xff pattern:$0x75316420] }
 0x11f   :  { %v136_v50 = vld.sshfl [vmem:[#allocation1] sm:$0xff pattern:$0x75316420]  ;;  %v137_v51 = vld.sshfl [vmem:[#allocation1 + $0x8] sm:$0xff pattern:$0x75316420] }
 0x120   :  { %v146_v52 = vsel %vm29_vm0, %v136_v50, 0.0  ;;  %v147_v53 = vsel %vm29_vm0, %v137_v51, 0.0  ;;  %v113_v54 = vsel %vm29_vm0, %v101_v48, 0.0  ;;  %v114_v55 = vsel %vm29_vm0, %v102_v49, 0.0  ;;  %139 = vst [vmem:[#allocation1 + $0x10] ss:$2 sm:$0xff] %v132_v47 }
 0x121   :  { %v148_v56 = vadd.f32 %v147_v53, %v146_v52  ;;  %v115_v57 = vadd.f32 %v114_v55, %v113_v54  ;;  %v184_v14 = vsub.f32 1.0, %v183_v9 }
 0x123   :  { %149 = vadd.xlane.f32.xlu0 %v148_v56  ;;  %116 = vadd.xlane.f32.xlu2 %v115_v57  ;;  %v185_v19 = vmul.f32 %v223_v6, %v184_v14 }
 0x125   :  { %v186_v26 = vadd.f32 %v223_v6, %v185_v19 }
 0x127   :  { %v140_v58 = vld.sshfl [vmem:[#allocation1 + $0x10] sm:$0xff pattern:$0x75316420]  ;;  %v141_v59 = vld.sshfl [vmem:[#allocation1 + $0x18] sm:$0xff pattern:$0x75316420]  ;;  %v188_v27 = vsel %vm187_vm4, %v223_v6, %v186_v26 }
 0x128   :  { %v151_v60 = vsel %vm29_vm0, %v140_v58, 0.0  ;;  %v152_v61 = vsel %vm29_vm0, %v141_v59, 0.0 }
 0x129   :  { %v153_v62 = vadd.f32 %v152_v61, %v151_v60 }
 0x12b   :  { %154 = vadd.xlane.f32.xlu1 %v153_v62 }
 0x18d   :  { %v112_v0 = vpop.xlane.xlu2 %111 }
 0x18e   :  { %v122_v3 = vperm.slane %v112_v0, %v257_v22 }
 0x196   :  { %v117_v2 = vpop.xlane.xlu2 %116  ;;  %v150_v10 = vpop.xlane.xlu0 %149 }
 0x197   :  { %v123_v5 = vperm.slane %v117_v2, %v257_v22  ;;  %v158_v12 = vperm.slane %v150_v10, %v257_v22 }
 0x199   :  { %v125_v7 = vsel %vm55_vm2, %v123_v5, %v122_v3 }
 0x19a   :  { %v127_v8 = vadd.f32 %v125_v7, %v93_v4 }
 0x19c   :  { %129 = vst.msk [vmem:[%s318_s1] sm:$0x3] %vm58_vm3, %v127_v8 }
 0x19e   :  { %v155_v11 = vpop.xlane.xlu1 %154 }
 0x19f   :  { %v159_v15 = vperm.slane %v155_v11, %v257_v22 }
 0x1a1   :  { %v160_v16 = vsel %vm55_vm2, %v159_v15, %v158_v12 }
 0x1a2   :  { %v162_v17 = vadd.f32 %v160_v16, %v130_v13 }
 0x1a3   :  { %v167_v18 = vld [vmem:[%s318_s1] sm:$0x3] }
 0x1a4   :  { %v177_v20 = vmul.f32 %v167_v18, %v255_v21  ;;  %163 = vst.msk [vmem:[%s319_s2] sm:$0x3] %vm58_vm3, %v162_v17  ;;  %v179_v25 = vmul.f32 %v167_v18, %v167_v18 }
 0x1a6   :  { %v178_v24 = vadd.f32 %v177_v20, %v169_v23  ;;  %v180_v22 = vmul.f32 %v179_v25, %v255_v21 }
 0x1a8   :  { %190 = vst.msk [vmem:[%s318_s1] sm:$0x3] %vm58_vm3, %v178_v24 }
 0x1ab   :  { %v168_v28 = vld [vmem:[%s319_s2] sm:$0x3] }
 0x1ac   :  { %v181_v29 = vsub.f32 %v168_v28, %v180_v22 }
 0x1ae   :  { %v189_v30 = vmul.f32 %v188_v27, %v181_v29 }
 0x1b0   :  { %v191_v31 = vmax.f32 %v189_v30, 0.0 }
 0x1b2   :  { %v192_v32 = vadd.f32 1e-06, %v191_v31 }
 0x1b4   :  { %224 = vrsqrt.f32 %v192_v32  ;;  %vm200_vm5 = vcmp.eq.f32.partialorder %v192_v32, inf  ;;  %v203_v40 = vand.u32 2147483648, %v192_v32  ;;  %vm202_vm6 = vcmp.eq.f32.partialorder %v192_v32, 0.0 }
 0x1ba   :  { %v225_v33 = vpop.eup %224 }
 0x1bb   :  { %v194_v34 = vmul.f32 %v225_v33, %v192_v32 }
 0x1bd   :  { %v195_v35 = vmul.f32 %v225_v33, %v194_v34 }
 0x1bf   :  { %v196_v36 = vmul.f32 0.5, %v195_v35 }
 0x1c1   :  { %v197_v37 = vsub.f32 1.5, %v196_v36 }
 0x1c3   :  { %v198_v38 = vmul.f32 %v225_v33, %v197_v37 }
 0x1c5   :  { %v199_v39 = vmul.f32 %v198_v38, %v192_v32 }
 0x1c7   :  { %v201_v21 = vsel %vm200_vm5, %v192_v32, %v199_v39 }
 0x1c8   :  { %v204_v41 = vsel %vm202_vm6, %v203_v40, %v201_v21 }
 0x1c9   :  { %205 = vst.msk [vmem:[%s319_s2] sm:$0x3] %vm58_vm3, %v204_v41 }

</bundles_post_ra>
